<compile_context>
chip_gen: v7x
topology: tpu7x:2x2x1
jax: 0.10.0
libtpu: 0.0.40
codegen_flags: <defaults>
</compile_context>

<pallas_src>
import math

import jax
import jax.numpy as jnp
from jax.experimental import pallas as pl
from jax.experimental.pallas import tpu as pltpu

_LANE = 128     # vreg lane width
_SUBLANE = 8    # f32 sublane count


def _round_up(x, m):
    return (x + m - 1) // m * m


def _affine_kernel(x_ref, w_ref, b_ref, o_ref):
    # One fused layer per tile: y = x @ W + b (single MXU matmul; bias add is
    # free VALU filler for this HBM-bound kernel).
    o_ref[...] = (
        jnp.dot(x_ref[...], w_ref[...], preferred_element_type=jnp.float32)
        + b_ref[...]
    ).astype(o_ref.dtype)


def _fuse_affine(params):
    """Collapse Linear->Linear->Linear (no activations) into one affine map."""
    w1, b1 = params["w1"], params["b1"]
    w2, b2 = params["w2"], params["b2"]
    w3, b3 = params["w3"], params["b3"]
    w = w1 @ w2 @ w3                      # [in, out]
    b = b1 @ w2 @ w3 + b2 @ w3 + b3       # [1, out]
    return w, b


def seaice_forward(x, params, *, block_batch=4096, min_pallas_batch=1024,
                   use_pallas=None):
    """Forward pass of SeaiceModel.

    x: [N, input_size] f32.  params: w1,b1,w2,b2,w3,b3 with weights stored
    transposed, i.e. [in_features, out_features].
    """
    w, b = _fuse_affine(params)
    n, in_size = x.shape
    out_size = w.shape[1]

    if use_pallas is None:
        use_pallas = n >= min_pallas_batch
    if not use_pallas:
        # Tiny batches: pallas_call fixed overhead dwarfs the work.
        return x @ w + b

    # ---- batch-in-lanes packing --------------------------------------------
    # Pack P consecutive rows into one "packed row" so loads and stores are
    # fully lane-dense. P is the smallest factor making P*out a multiple of 128.
    p = _LANE // math.gcd(_LANE, out_size)
    kp = p * in_size              # packed contraction dim
    np_ = p * out_size            # packed output dim (multiple of 128)

    n_pad = _round_up(n, p)
    x_use = x if n_pad == n else jnp.pad(x, ((0, n_pad - n), (0, 0)))
    ng = n_pad // p
    x_packed = x_use.reshape(ng, kp)                    # contiguous (free) reshape

    w_packed = jnp.kron(jnp.eye(p, dtype=w.dtype), w)   # blockdiag -> (kp, np_)
    b_packed = jnp.tile(b, (1, p))                      # (1, np_)

    # ---- batch tiling --------------------------------------------------------
    tb_target = max(_SUBLANE, _round_up(max(block_batch // p, 1), _SUBLANE))
    if ng <= _SUBLANE:
        tb = ng                                   # single full-extent block
    else:
        # Cap the tile so the "parallel" grid keeps >= 2 steps (v7x megacore).
        tb = min(tb_target, _round_up(pl.cdiv(ng, 2), _SUBLANE))
    grid = (pl.cdiv(ng, tb),)

    # VMEM budget: double-buffered x/out tiles + resident packed W/b (+headroom).
    vmem_bytes = (2 * (tb * kp + tb * np_) + kp * np_ + np_) * 4
    vmem_limit = int(min(max(2 * vmem_bytes, 1 << 20), 32 << 20))

    cost = pl.CostEstimate(
        flops=2 * ng * kp * np_,
        transcendentals=0,
        bytes_accessed=4 * (ng * kp + kp * np_ + np_ + ng * np_),
    )

    out_packed = pl.pallas_call(
        _affine_kernel,
        out_shape=jax.ShapeDtypeStruct((ng, np_), jnp.float32),
        grid=grid,
        in_specs=[
            pl.BlockSpec((tb, kp), lambda i: (i, 0)),    # packed batch tile
            pl.BlockSpec((kp, np_), lambda i: (0, 0)),   # packed fused W (resident)
            pl.BlockSpec((1, np_), lambda i: (0, 0)),    # packed fused b (resident)
        ],
        out_specs=pl.BlockSpec((tb, np_), lambda i: (i, 0)),
        compiler_params=pltpu.CompilerParams(
            dimension_semantics=("parallel",),
            vmem_limit_bytes=vmem_limit,
        ),
        cost_estimate=cost,
    )(x_packed, w_packed, b_packed)

    y = out_packed.reshape(n_pad, out_size)              # contiguous (free) reshape
    return y if n_pad == n else y[:n]


def init_params(key, input_size, hidden_size, output_size):
    """Deterministic synthetic init mirroring nn.Linear shapes.

    PyTorch nn.Linear(in, out) has weight [out, in], bias [out]; we store the
    transposed weight [in, out] for direct use as `x @ W`.
    """
    ks = jax.random.split(key, 6)

    def linear(kw, kb, fan_in, fan_out):
        bound = 1.0 / jnp.sqrt(fan_in)
        w = jax.random.uniform(kw, (fan_in, fan_out), jnp.float32, -bound, bound)
        b = jax.random.uniform(kb, (1, fan_out), jnp.float32, -bound, bound)
        return w, b

    w1, b1 = linear(ks[0], ks[1], input_size, hidden_size)
    w2, b2 = linear(ks[2], ks[3], hidden_size, hidden_size)
    w3, b3 = linear(ks[4], ks[5], hidden_size, output_size)
    return {"w1": w1, "b1": b1, "w2": w2, "b2": b2, "w3": w3, "b3": b3}


if __name__ == "__main__":
    input_size, hidden_size, output_size = 16, 32, 8

    key = jax.random.PRNGKey(0)
    k_x, k_x2, k_p = jax.random.split(key, 3)
    params = init_params(k_p, input_size, hidden_size, output_size)

    # Pure-JAX reference of the original (unfused) 3-layer forward pass.
    def ref_forward(xx):
        h = xx @ params["w1"] + params["b1"]
        h = h @ params["w2"] + params["b2"]
        return h @ params["w3"] + params["b3"]

    # 1) Main Pallas run (batch multiple of the pack factor 16).
    x = jax.random.normal(k_x, (64, input_size), jnp.float32)
    out = jax.block_until_ready(seaice_forward(x, params, use_pallas=True))
    assert out.shape == (64, output_size)
    assert jnp.allclose(out, ref_forward(x), atol=1e-4, rtol=1e-4), \
        float(jnp.max(jnp.abs(out - ref_forward(x))))

    # 2) Ragged batch through Pallas (exercises pad-to-pack + full-extent block).
    x2 = jax.random.normal(k_x2, (37, input_size), jnp.float32)
    out2 = jax.block_until_ready(seaice_forward(x2, params, use_pallas=True))
    assert out2.shape == (37, output_size)
    assert jnp.allclose(out2, ref_forward(x2), atol=1e-4, rtol=1e-4)

    # 3) Small batch: auto-dispatch takes the plain-XLA affine path.
    x3 = x2[:8]
    out3 = jax.block_until_ready(seaice_forward(x3, params))
    assert out3.shape == (8, output_size)
    assert jnp.allclose(out3, ref_forward(x3), atol=1e-4, rtol=1e-4)

    print("KERNEL_OK")
</pallas_src>

<mosaic_0001>
module attributes {stable_mosaic.version = 11 : i64} {
  func.func @_affine_kernel(%arg0: i32, %arg1: memref<4x256xf32, #tpu.memory_space<vmem>>, %arg2: memref<256x128xf32, #tpu.memory_space<vmem>>, %arg3: memref<1x128xf32, #tpu.memory_space<vmem>>, %arg4: memref<4x128xf32, #tpu.memory_space<vmem>>) attributes {dimension_semantics = [#tpu.dimension_semantics<parallel>], iteration_bounds = array<i64: 1>, scalar_prefetch = 0 : i64, scratch_operands = 0 : i64, tpu.core_type = #tpu.core_type<tc>, window_params = [{transform_indices = @transform_0, window_bounds = array<i64: 4, 256>}, {pipeline_mode = #tpu.pipeline_mode<synchronous>, transform_indices = @transform_1, window_bounds = array<i64: 256, 128>}, {pipeline_mode = #tpu.pipeline_mode<synchronous>, transform_indices = @transform_2, window_bounds = array<i64: 1, 128>}, {transform_indices = @transform_3, window_bounds = array<i64: 4, 128>}]} {
    %c0 = arith.constant 0 : index
    %c0_0 = arith.constant 0 : index
    %0 = vector.load %arg1[%c0, %c0_0] : memref<4x256xf32, #tpu.memory_space<vmem>>, vector<4x256xf32>
    %c0_1 = arith.constant 0 : index
    %c0_2 = arith.constant 0 : index
    %1 = vector.load %arg2[%c0_1, %c0_2] : memref<256x128xf32, #tpu.memory_space<vmem>>, vector<256x128xf32>
    %cst = arith.constant dense<0.000000e+00> : vector<4x128xf32>
    %2 = tpu.matmul %0, %1, %cst {dimension_numbers = #tpu.dot_dimension_numbers<[1], [0], [0], [1], [0, 0, 1, 1], [], []>} : vector<4x256xf32>, vector<256x128xf32>, vector<4x128xf32> -> vector<4x128xf32>
    %c0_3 = arith.constant 0 : index
    %c0_4 = arith.constant 0 : index
    %3 = vector.load %arg3[%c0_3, %c0_4] : memref<1x128xf32, #tpu.memory_space<vmem>>, vector<1x128xf32>
    %4 = vector.broadcast %3 : vector<1x128xf32> to vector<4x128xf32>
    %5 = arith.addf %2, %4 : vector<4x128xf32>
    %c0_5 = arith.constant 0 : index
    %c0_6 = arith.constant 0 : index
    %6 = vector.load %arg4[%c0_5, %c0_6] : memref<4x128xf32, #tpu.memory_space<vmem>>, vector<4x128xf32>
    tpu.vector_store %arg4[%c0_5, %c0_6], %5 {strides = array<i32>} : memref<4x128xf32, #tpu.memory_space<vmem>>, vector<4x128xf32>,
    return
  }
  func.func @transform_0(%arg0: i32) -> (i32, i32) {
    %c0_i32 = arith.constant 0 : i32
    %c0_i32_0 = arith.constant 0 : i32
    return %arg0, %c0_i32 : i32, i32
  }
  func.func @transform_1(%arg0: i32) -> (i32, i32) {
    %c0_i32 = arith.constant 0 : i32
    %c0_i32_0 = arith.constant 0 : i32
    %c0_i32_1 = arith.constant 0 : i32
    return %c0_i32, %c0_i32_0 : i32, i32
  }
  func.func @transform_2(%arg0: i32) -> (i32, i32) {
    %c0_i32 = arith.constant 0 : i32
    %c0_i32_0 = arith.constant 0 : i32
    %c0_i32_1 = arith.constant 0 : i32
    return %c0_i32, %c0_i32_0 : i32, i32
  }
  func.func @transform_3(%arg0: i32) -> (i32, i32) {
    %c0_i32 = arith.constant 0 : i32
    %c0_i32_0 = arith.constant 0 : i32
    return %arg0, %c0_i32 : i32, i32
  }
}

</mosaic_0001>

<bundles_post_ra>
// kernel: tpu_custom_call.1
= control target key start
LH: loop header
LB: loop body
LE: loop exit
PB: predicated region body
PF: predicated region fallthrough
CT: control target
= control target key end

     0   :  { %8 = vsyncpa [#allocation3], 0  ;;  %s388_s0 = inlined_call_operand.hbm [shape: f32[4,256], index: 0, kind: input, shape index: {}]   ;;  %s389_s1 = inlined_call_operand.hbm [shape: f32[256,128], index: 1, kind: input, shape index: {}]   ;;  %s390_s2 = inlined_call_operand.vmem [shape: f32[1,128], index: 2, kind: input, shape index: {}]   ;;  %s391_s3 = inlined_call_operand.hbm [shape: f32[4,128], index: 3, kind: output, shape index: {}]  }
   0x1   :  { %9 = vsyncpa [#allocation6], 0 }
   0x2   :  { %10 = vsyncpa [#allocation4], 0  ;;  %s317_s12 = smov [#allocation2]   ;;  %s318_s14 = smov [#allocation5]  }
   0x3   :  { %s17_s13 = sshll.u32 %s317_s12, 4  ;;  %s26_s15 = sshll.u32 %s318_s14, 4  ;;  %s18_s13 = int_to_ptr.vmem [resolvable:$true] %s17_s13  ;;  %s342_s15 = int_to_ptr.vmem [resolvable:$true] %s26_s15 }
   0x4   :  { %s245_s18 = scalar_lea.hbm %s388_s0, 128 }
   0x5   :  { %p246_p0 = scmp.ne.s32.totalorder %s388_s0, %s245_s18  ;;  %p249_p1 = scmp.lt.u32.totalorder %s245_s18, %s388_s0 }
   0x7   :  { %p251_p2 = pnand %p249_p1, %p246_p0 }
   0x9   :  { %254 = shalt.err (!%p251_p2)
}
   0xa   :  { %s255_s23 = scalar_lea.vmem %s18_s13, 128  ;;  %p260_p4 = scmp.lt.s32.totalorder %s18_s13, %s18_s13 }
   0xb   :  { %p256_p3 = scmp.ne.s32.totalorder %s18_s13, %s255_s23  ;;  %p261_p5 = scmp.lt.s32.totalorder %s255_s23, %s255_s23 }
   0xd   :  { %p262_p6 = por %p261_p5, %p260_p4 }
   0xf   :  { %p263_p7 = pnand %p262_p6, %p256_p3 }
  0x11   :  { %266 = shalt.err (!%p263_p7)
}
  0x12   :  { %20 = dma.hbm_to_vmem [thread:$0]  %s388_s0, 128, %s18_s13, [#allocation3]  }
  0x13   :  { %s267_s28 = scalar_lea.hbm %s389_s1, 4096 }
  0x14   :  { %p268_p8 = scmp.ne.s32.totalorder %s389_s1, %s267_s28  ;;  %p271_p9 = scmp.lt.u32.totalorder %s267_s28, %s389_s1 }
  0x16   :  { %p273_p10 = pnand %p271_p9, %p268_p8 }
  0x18   :  { %276 = shalt.err (!%p273_p10)
}
  0x19   :  { %s277_s6 = scalar_lea.vmem %s342_s15, 4096  ;;  %p282_p12 = scmp.lt.s32.totalorder %s342_s15, %s342_s15 }
  0x1a   :  { %p278_p11 = scmp.ne.s32.totalorder %s342_s15, %s277_s6  ;;  %p283_p13 = scmp.lt.s32.totalorder %s277_s6, %s277_s6 }
  0x1c   :  { %p284_p0 = por %p283_p13, %p282_p12 }
  0x1e   :  { %p285_p1 = pnand %p284_p0, %p278_p11 }
  0x20   :  { %288 = shalt.err (!%p285_p1)
}
  0x21   :  { %s319_s0 = smov 128   ;;  %s320_s7 = smov 8  }
  0x22   :  { %32 = dma.hbm_to_vmem [thread:$0]  %s389_s1, 4096, %s342_s15, [#allocation6], %s319_s0, %s319_s0, %s320_s7  }
  0x23   :  { %311 = dma.done.wait [#allocation3], 128  }
  0x24   :  { %312 = vsyncadd [#allocation3], 4294967168 }
  0x25   :  { %313 = dma.done.wait [#allocation6], 4096  }
  0x26   :  { %314 = vsyncadd [#allocation6], 4294963200  ;;  %v58_v0 = vld [vmem:[#allocation5 + $0x80] sm:$0xff]  ;;  %v59_v1 = vld [vmem:[#allocation5 + $0x88] sm:$0xff]  ;;  %s321_s11 = smov [#allocation7]  }
  0x27   :  { %v42_v2 = vld [vmem:[#allocation5] sm:$0xff]  ;;  %v207_v3 = vpack.c.bf16 %v59_v1, %v58_v0  ;;  %v43_v4 = vld [vmem:[#allocation5 + $0x8] sm:$0xff]  ;;  %v60_v5 = vld [vmem:[#allocation5 + $0x90] sm:$0xff]  ;;  %s161_s12 = sshll.u32 %s321_s11, 4  ;;  %s162_s12 = int_to_ptr.vmem [resolvable:$true] %s161_s12 }
  0x28   :  { %v61_v6 = vld [vmem:[#allocation5 + $0x98] sm:$0xff]  ;;  %v209_v7 = vpack.c.bf16 %v43_v4, %v42_v2  ;;  %v44_v9 = vld [vmem:[#allocation5 + $0x10] sm:$0xff]  ;;  %v62_v11 = vld [vmem:[#allocation5 + $0xa0] sm:$0xff]  ;;  %s289_s13 = scalar_lea.vmem %s162_s12, 64  ;;  %p294_p3 = scmp.lt.s32.totalorder %s162_s12, %s162_s12 }
  0x29   :  { %v211_v8 = vpack.c.bf16 %v61_v6, %v60_v5  ;;  %v45_v10 = vld [vmem:[#allocation5 + $0x18] sm:$0xff]  ;;  %208 = vmatprep.subr.bf16.mxu0 %v207_v3  ;;  %v63_v12 = vld [vmem:[#allocation5 + $0xa8] sm:$0xff]  ;;  %v46_v15 = vld [vmem:[#allocation5 + $0x20] sm:$0xff]  ;;  %p290_p2 = scmp.ne.s32.totalorder %s162_s12, %s289_s13  ;;  %p295_p4 = scmp.lt.s32.totalorder %s289_s13, %s289_s13 }
  0x2a   :  { %210 = vmatpush3.bf16.msra.mxu0 %v209_v7  ;;  %v213_v13 = vpack.c.bf16 %v45_v10, %v44_v9  ;;  %v215_v14 = vpack.c.bf16 %v63_v12, %v62_v11  ;;  %v47_v16 = vld [vmem:[#allocation5 + $0x28] sm:$0xff]  ;;  %v64_v17 = vld [vmem:[#allocation5 + $0xb0] sm:$0xff]  ;;  %v65_v18 = vld [vmem:[#allocation5 + $0xb8] sm:$0xff] }
  0x2b   :  { %212 = vmatprep.subr.bf16.mxu0 %v211_v8  ;;  %v217_v19 = vpack.c.bf16 %v47_v16, %v46_v15  ;;  %v219_v20 = vpack.c.bf16 %v65_v18, %v64_v17  ;;  %v48_v21 = vld [vmem:[#allocation5 + $0x30] sm:$0xff]  ;;  %v49_v22 = vld [vmem:[#allocation5 + $0x38] sm:$0xff]  ;;  %v66_v23 = vld [vmem:[#allocation5 + $0xc0] sm:$0xff]  ;;  %p296_p5 = por %p295_p4, %p294_p3 }
  0x2c   :  { %v67_v24 = vld [vmem:[#allocation5 + $0xc8] sm:$0xff]  ;;  %v41_v25 = vld [vmem:[#allocation2] sm:$0xff]  ;;  %v221_v27 = vpack.c.bf16 %v49_v22, %v48_v21  ;;  %v50_v29 = vld [vmem:[#allocation5 + $0x40] sm:$0xff] }
  0x2d   :  { %v82_v26 = vcombine.high %v41_v25, %v41_v25  ;;  %v223_v28 = vpack.c.bf16 %v67_v24, %v66_v23  ;;  %v51_v30 = vld [vmem:[#allocation5 + $0x48] sm:$0xff]  ;;  %v68_v31 = vld [vmem:[#allocation5 + $0xd0] sm:$0xff]  ;;  %v69_v32 = vld [vmem:[#allocation5 + $0xd8] sm:$0xff]  ;;  %p297_p6 = pnand %p296_p5, %p290_p2 }
  0x2e   :  { %214 = vmatpush3.bf16.msra.mxu0 %v213_v13  ;;  %v225_v33 = vpack.c.bf16 %v51_v30, %v50_v29  ;;  %v227_v34 = vpack.c.bf16 %v69_v32, %v68_v31  ;;  %v52_v35 = vld [vmem:[#allocation5 + $0x50] sm:$0xff]  ;;  %v53_v36 = vld [vmem:[#allocation5 + $0x58] sm:$0xff]  ;;  %v70_v37 = vld [vmem:[#allocation5 + $0xe0] sm:$0xff] }
  0x2f   :  { %216 = vmatprep.subr.bf16.mxu0 %v215_v14  ;;  %148 = vmatprep.mubr.f32.mxu0 %v82_v26  ;;  %v71_v38 = vld [vmem:[#allocation5 + $0xe8] sm:$0xff]  ;;  %v229_v39 = vpack.c.bf16 %v53_v36, %v52_v35  ;;  %v54_v41 = vld [vmem:[#allocation5 + $0x60] sm:$0xff]  ;;  %v72_v43 = vld [vmem:[#allocation5 + $0xf0] sm:$0xff] }
  0x30   :  { %v231_v40 = vpack.c.bf16 %v71_v38, %v70_v37  ;;  %v55_v42 = vld [vmem:[#allocation5 + $0x68] sm:$0xff]  ;;  %v73_v44 = vld [vmem:[#allocation5 + $0xf8] sm:$0xff]  ;;  %v56_v47 = vld [vmem:[#allocation5 + $0x70] sm:$0xff] }
  0x31   :  { %v233_v45 = vpack.c.bf16 %v55_v42, %v54_v41  ;;  %v235_v46 = vpack.c.bf16 %v73_v44, %v72_v43  ;;  %v57_v48 = vld [vmem:[#allocation5 + $0x78] sm:$0xff] }
  0x32   :  { %218 = vmatpush3.bf16.msra.mxu0 %v217_v19  ;;  %v237_v49 = vpack.c.bf16 %v57_v48, %v56_v47  ;;  %v171_v51 = vld [vmem:[%s390_s2] ss:$0 sm:$0xff] }
  0x33   :  { %220 = vmatprep.subr.bf16.mxu0 %v219_v20 }
  0x36   :  { %222 = vmatpush3.bf16.msra.mxu0 %v221_v27 }
  0x37   :  { %224 = vmatprep.subr.bf16.mxu0 %v223_v28 }
  0x3a   :  { %226 = vmatpush3.bf16.msra.mxu0 %v225_v33 }
  0x3b   :  { %228 = vmatprep.subr.bf16.mxu0 %v227_v34 }
  0x3e   :  { %230 = vmatpush3.bf16.msra.mxu0 %v229_v39 }
  0x3f   :  { %232 = vmatprep.subr.bf16.mxu0 %v231_v40 }
  0x42   :  { %234 = vmatpush3.bf16.msra.mxu0 %v233_v45 }
  0x43   :  { %236 = vmatprep.subr.bf16.mxu0 %v235_v46 }
  0x46   :  { %238 = vmatpush3.bf16.msra.mxu0 %v237_v49 }
  0x49   :  { %149 = vmatmul.mubr.f32.vlgmr.msra.gmra.mrb[0].mxu0 %v41_v25 }
 0x11c   :  { %v204_v50 = vpop.f32.mrb[0].mxu0 }
 0x11d   :  { %v205_v52 = vpop.f32.mrb[1].mxu0 }
 0x11e   :  { %v206_v53 = vadd.f32 %v205_v52, %v204_v50 }
 0x120   :  { %v151_v54 = vadd.f32 %v206_v53, %v171_v51 }
 0x122   :  { %154 = vst [vmem:[#allocation7] sm:$0xf] %v151_v54 }
 0x123   :  { %300 = shalt.err (!%p297_p6)
}
 0x124   :  { %s301_s16 = scalar_lea.hbm %s391_s3, 64 }
 0x125   :  { %p302_p7 = scmp.ne.s32.totalorder %s391_s3, %s301_s16  ;;  %p305_p8 = scmp.lt.u32.totalorder %s301_s16, %s391_s3 }
 0x127   :  { %p307_p9 = pnand %p305_p8, %p302_p7 }
 0x129   :  { %310 = shalt.err (!%p307_p9)
}
 0x12a   :  { %164 = dma.vmem_to_hbm [thread:$0]  %s162_s12, 64, %s391_s3, [#allocation4]  }
 0x12b   :  { %315 = dma.done.wait [#allocation4], 64  }
 0x12c   :  { %316 = vsyncadd [#allocation4], 4294967232 }
 0x12d   :  { %168 = vsyncpa [#allocation3], 1 }
 0x12e   :  { %169 = vsyncpa [#allocation6], 1 }
 0x12f   :  { %170 = vsyncpa [#allocation4], 1 }

</bundles_post_ra>
